<compile_context>
chip_gen: v6e
topology: v6e:2x2x1
jax: 0.10.0
libtpu: 0.0.40
codegen_flags: <defaults>
</compile_context>

<pallas_src>
import jax
import jax.numpy as jnp
from jax import lax
from jax.experimental import pallas as pl
from jax.experimental.pallas import tpu as pltpu

KH = KW = 7
PAD = 3
BN_EPS = 1e-5


def _conv_gemm_stats_kernel(p_ref, w_ref, out_ref, sum_ref, ssq_ref):
    # p_ref:   [TM, K]    im2col patches for TM output pixels (K = KH*KW*C)
    # w_ref:   [K, O]     conv weights
    # out_ref: [TM, O]    conv output (pre-BN, f32)
    # sum_ref: [1, 1, O]  per-tile channel sum        (fused BN stats)
    # ssq_ref: [1, 1, O]  per-tile channel sum-of-sq  (fused BN stats)
    acc = jnp.dot(p_ref[...], w_ref[...], preferred_element_type=jnp.float32)
    out_ref[...] = acc
    sum_ref[0] = jnp.sum(acc, axis=0, keepdims=True)
    ssq_ref[0] = jnp.sum(acc * acc, axis=0, keepdims=True)


def _bn_relu_kernel(y_ref, scale_ref, shift_ref, out_ref):
    # y_ref / out_ref: [TB, r*O] lane-dense tiles; scale/shift: [1, r*O]
    out_ref[...] = jnp.maximum(
        y_ref[...] * scale_ref[...] + shift_ref[...], 0.0)


def conv_block_forward(x_nchw, weight, bias, gamma, beta, *,
                       eps=BN_EPS, tm=256, use_bf16_matmul=False):
    """Forward pass of the `conv` module (init=True).  x_nchw: [B, C, H, W]."""
    B, C, H, W = x_nchw.shape
    O = weight.shape[0]
    K = KH * KW * C
    rows = B * H * W

    # --- plain-JAX glue: layout, reflection pad, im2col patch extraction ----
    x = jnp.transpose(x_nchw, (0, 2, 3, 1)).astype(jnp.float32)       # NHWC
    xpad = jnp.pad(x, ((0, 0), (PAD, PAD), (PAD, PAD), (0, 0)), mode="reflect")
    # Feature order (kh, kw, c) — must match the weight reshape below.
    patches = jnp.concatenate(
        [xpad[:, kh:kh + H, kw:kw + W, :]
         for kh in range(KH) for kw in range(KW)],
        axis=-1).reshape(rows, K)
    # PyTorch weight [O, C, KH, KW] -> [KH, KW, C, O] -> [K, O]
    w2 = jnp.transpose(weight, (2, 3, 1, 0)).reshape(K, O).astype(jnp.float32)

    # Conv bias cancels exactly through the training-mode batch mean -> drop.
    del bias

    if use_bf16_matmul:   # v6e/v7x: ~2x MXU rate, half the DMA bytes
        patches = patches.astype(jnp.bfloat16)
        w2 = w2.astype(jnp.bfloat16)

    # Row tiling: pad rows up to a multiple of tm with zeros. Zero rows
    # contribute 0 to the fused sums, so the BN statistics stay exact.
    tm = min(tm, max(8, ((rows + 7) // 8) * 8))
    rows_p = pl.cdiv(rows, tm) * tm
    if rows_p != rows:
        patches = jnp.pad(patches, ((0, rows_p - rows), (0, 0)))
    num_tiles = rows_p // tm

    conv_out, tile_sum, tile_ssq = pl.pallas_call(
        _conv_gemm_stats_kernel,
        out_shape=(
            jax.ShapeDtypeStruct((rows_p, O), jnp.float32),
            jax.ShapeDtypeStruct((num_tiles, 1, O), jnp.float32),
            jax.ShapeDtypeStruct((num_tiles, 1, O), jnp.float32),
        ),
        grid=(num_tiles,),
        in_specs=[
            pl.BlockSpec((tm, K), lambda i: (i, 0)),
            pl.BlockSpec((K, O), lambda i: (0, 0)),
        ],
        out_specs=(
            pl.BlockSpec((tm, O), lambda i: (i, 0)),
            pl.BlockSpec((1, 1, O), lambda i: (i, 0, 0)),
            pl.BlockSpec((1, 1, O), lambda i: (i, 0, 0)),
        ),
        compiler_params=pltpu.CompilerParams(
            dimension_semantics=("parallel",)),
    )(patches, w2)

    # --- BN statistics from fused per-tile partial sums (tiny reduction) ----
    n = jnp.float32(rows)
    mean = jnp.sum(tile_sum[:, 0, :], axis=0) / n
    var = jnp.maximum(
        jnp.sum(tile_ssq[:, 0, :], axis=0) / n - mean * mean, 0.0)
    scale = gamma.astype(jnp.float32) * lax.rsqrt(var + eps)
    shift = beta.astype(jnp.float32) - mean * scale

    # --- lane-dense BN + ReLU pass ------------------------------------------
    if (O < 128 and 128 % O == 0 and tm % (128 // O) == 0
            and (tm // (128 // O)) % 8 == 0):
        r = 128 // O          # pack r pixels per row so the last dim is 128
    else:
        r = 1
    tb = tm // r
    rows_r = rows_p // r
    scale_t = jnp.tile(scale, r).reshape(1, r * O)
    shift_t = jnp.tile(shift, r).reshape(1, r * O)

    y_flat = pl.pallas_call(
        _bn_relu_kernel,
        out_shape=jax.ShapeDtypeStruct((rows_r, r * O), jnp.float32),
        grid=(num_tiles,),
        in_specs=[
            pl.BlockSpec((tb, r * O), lambda i: (i, 0)),
            pl.BlockSpec((1, r * O), lambda i: (0, 0)),
            pl.BlockSpec((1, r * O), lambda i: (0, 0)),
        ],
        out_specs=pl.BlockSpec((tb, r * O), lambda i: (i, 0)),
        compiler_params=pltpu.CompilerParams(
            dimension_semantics=("parallel",)),
    )(conv_out.reshape(rows_r, r * O), scale_t, shift_t)

    y = y_flat.reshape(rows_p, O)[:rows].reshape(B, H, W, O)
    return jnp.transpose(y, (0, 3, 1, 2))   # NHWC -> NCHW (PyTorch convention)


def _reference_forward(x_nchw, weight, bias, gamma, beta, eps=BN_EPS):
    """Pure-JAX reference (same semantics) for correctness checking."""
    x = jnp.transpose(x_nchw, (0, 2, 3, 1)).astype(jnp.float32)
    xpad = jnp.pad(x, ((0, 0), (PAD, PAD), (PAD, PAD), (0, 0)), mode="reflect")
    w_hwio = jnp.transpose(weight, (2, 3, 1, 0)).astype(jnp.float32)
    conv = lax.conv_general_dilated(
        xpad, w_hwio, window_strides=(1, 1), padding="VALID",
        dimension_numbers=("NHWC", "HWIO", "NHWC")) + bias.reshape(1, 1, 1, -1)
    mean = jnp.mean(conv, axis=(0, 1, 2))
    var = jnp.mean(jnp.square(conv - mean), axis=(0, 1, 2))
    y = (conv - mean) / jnp.sqrt(var + eps) * gamma + beta
    y = jnp.maximum(y, 0.0)
    return jnp.transpose(y, (0, 3, 1, 2))


if __name__ == "__main__":
    B, C_IN, C_OUT, H, W = 2, 4, 8, 16, 16

    key = jax.random.PRNGKey(0)
    kx, kw, kb, kg, kbeta = jax.random.split(key, 5)

    x = jax.random.normal(kx, (B, C_IN, H, W), dtype=jnp.float32)

    # Deterministic param init (mimics PyTorch Conv2d uniform(-1/sqrt(fan_in), .)).
    fan_in = C_IN * KH * KW
    bound = 1.0 / jnp.sqrt(jnp.float32(fan_in))
    weight = jax.random.uniform(kw, (C_OUT, C_IN, KH, KW),
                                minval=-bound, maxval=bound, dtype=jnp.float32)
    bias = jax.random.uniform(kb, (C_OUT,), minval=-bound, maxval=bound,
                              dtype=jnp.float32)
    gamma = 1.0 + 0.1 * jax.random.normal(kg, (C_OUT,), dtype=jnp.float32)
    beta = 0.1 * jax.random.normal(kbeta, (C_OUT,), dtype=jnp.float32)

    out = jax.block_until_ready(
        conv_block_forward(x, weight, bias, gamma, beta))

    ref = jax.block_until_ready(
        _reference_forward(x, weight, bias, gamma, beta))

    assert out.shape == (B, C_OUT, H, W), out.shape
    assert jnp.allclose(out, ref, rtol=1e-4, atol=1e-4), (
        float(jnp.max(jnp.abs(out - ref))))

    print("KERNEL_OK")
</pallas_src>

<mosaic_0001>
module attributes {stable_mosaic.version = 11 : i64} {
  func.func @_conv_gemm_stats_kernel(%arg0: i32, %arg1: memref<256x196xf32, #tpu.memory_space<vmem>>, %arg2: memref<196x8xf32, #tpu.memory_space<vmem>>, %arg3: memref<256x8xf32, #tpu.memory_space<vmem>>, %arg4: memref<1x1x8xf32, #tpu.memory_space<vmem>>, %arg5: memref<1x1x8xf32, #tpu.memory_space<vmem>>) attributes {dimension_semantics = [#tpu.dimension_semantics<parallel>], iteration_bounds = array<i64: 2>, scalar_prefetch = 0 : i64, scratch_operands = 0 : i64, tpu.core_type = #tpu.core_type<tc>, window_params = [{transform_indices = @transform_0, window_bounds = array<i64: 256, 196>}, {pipeline_mode = #tpu.pipeline_mode<synchronous>, transform_indices = @transform_1, window_bounds = array<i64: 196, 8>}, {transform_indices = @transform_2, window_bounds = array<i64: 256, 8>}, {transform_indices = @transform_3, window_bounds = array<i64: 1, 1, 8>}, {transform_indices = @transform_4, window_bounds = array<i64: 1, 1, 8>}]} {
    %c0 = arith.constant 0 : index
    %c0_0 = arith.constant 0 : index
    %0 = vector.load %arg1[%c0, %c0_0] : memref<256x196xf32, #tpu.memory_space<vmem>>, vector<256x196xf32>
    %c0_1 = arith.constant 0 : index
    %c0_2 = arith.constant 0 : index
    %1 = vector.load %arg2[%c0_1, %c0_2] : memref<196x8xf32, #tpu.memory_space<vmem>>, vector<196x8xf32>
    %cst = arith.constant dense<0.000000e+00> : vector<256x8xf32>
    %2 = tpu.matmul %0, %1, %cst {dimension_numbers = #tpu.dot_dimension_numbers<[1], [0], [0], [1], [0, 0, 1, 1], [], []>} : vector<256x196xf32>, vector<196x8xf32>, vector<256x8xf32> -> vector<256x8xf32>
    %c0_3 = arith.constant 0 : index
    %c0_4 = arith.constant 0 : index
    %3 = vector.load %arg3[%c0_3, %c0_4] : memref<256x8xf32, #tpu.memory_space<vmem>>, vector<256x8xf32>
    tpu.vector_store %arg3[%c0_3, %c0_4], %2 {strides = array<i32>} : memref<256x8xf32, #tpu.memory_space<vmem>>, vector<256x8xf32>,
    %cst_5 = arith.constant dense<0.000000e+00> : vector<8xf32>
    %4 = vector.multi_reduction <add>, %2, %cst_5 [0] : vector<256x8xf32> to vector<8xf32>
    %5 = vector.shape_cast %4 : vector<8xf32> to vector<1x8xf32>
    %c0_6 = arith.constant 0 : index
    %c0_7 = arith.constant 0 : index
    %c0_8 = arith.constant 0 : index
    %6 = vector.load %arg4[%c0_6, %c0_7, %c0_8] : memref<1x1x8xf32, #tpu.memory_space<vmem>>, vector<1x1x8xf32>
    %7 = vector.shape_cast %6 : vector<1x1x8xf32> to vector<1x8xf32>
    %8 = vector.shape_cast %5 : vector<1x8xf32> to vector<1x1x8xf32>
    tpu.vector_store %arg4[%c0_6, %c0_7, %c0_8], %8 {strides = array<i32>} : memref<1x1x8xf32, #tpu.memory_space<vmem>>, vector<1x1x8xf32>,
    %9 = arith.mulf %2, %2 : vector<256x8xf32>
    %cst_9 = arith.constant dense<0.000000e+00> : vector<8xf32>
    %10 = vector.multi_reduction <add>, %9, %cst_9 [0] : vector<256x8xf32> to vector<8xf32>
    %11 = vector.shape_cast %10 : vector<8xf32> to vector<1x8xf32>
    %c0_10 = arith.constant 0 : index
    %c0_11 = arith.constant 0 : index
    %c0_12 = arith.constant 0 : index
    %12 = vector.load %arg5[%c0_10, %c0_11, %c0_12] : memref<1x1x8xf32, #tpu.memory_space<vmem>>, vector<1x1x8xf32>
    %13 = vector.shape_cast %12 : vector<1x1x8xf32> to vector<1x8xf32>
    %14 = vector.shape_cast %11 : vector<1x8xf32> to vector<1x1x8xf32>
    tpu.vector_store %arg5[%c0_10, %c0_11, %c0_12], %14 {strides = array<i32>} : memref<1x1x8xf32, #tpu.memory_space<vmem>>, vector<1x1x8xf32>,
    return
  }
  func.func @transform_0(%arg0: i32) -> (i32, i32) {
    %c0_i32 = arith.constant 0 : i32
    %c0_i32_0 = arith.constant 0 : i32
    return %arg0, %c0_i32 : i32, i32
  }
  func.func @transform_1(%arg0: i32) -> (i32, i32) {
    %c0_i32 = arith.constant 0 : i32
    %c0_i32_0 = arith.constant 0 : i32
    %c0_i32_1 = arith.constant 0 : i32
    return %c0_i32, %c0_i32_0 : i32, i32
  }
  func.func @transform_2(%arg0: i32) -> (i32, i32) {
    %c0_i32 = arith.constant 0 : i32
    %c0_i32_0 = arith.constant 0 : i32
    return %arg0, %c0_i32 : i32, i32
  }
  func.func @transform_3(%arg0: i32) -> (i32, i32, i32) {
    %c0_i32 = arith.constant 0 : i32
    %c0_i32_0 = arith.constant 0 : i32
    %c0_i32_1 = arith.constant 0 : i32
    return %arg0, %c0_i32, %c0_i32_0 : i32, i32, i32
  }
  func.func @transform_4(%arg0: i32) -> (i32, i32, i32) {
    %c0_i32 = arith.constant 0 : i32
    %c0_i32_0 = arith.constant 0 : i32
    %c0_i32_1 = arith.constant 0 : i32
    return %arg0, %c0_i32, %c0_i32_0 : i32, i32, i32
  }
}

</mosaic_0001>

<bundles_post_ra>
// kernel: tpu_custom_call.1
= control target key start
LH: loop header
LB: loop body
LE: loop exit
PB: predicated region body
PF: predicated region fallthrough
CT: control target
= control target key end

     0   :  { %10 = vsyncpa [#allocation3], 0  ;;  %s1846_s0 = inlined_call_operand.vmem [shape: f32[512,196], index: 0, kind: input, shape index: {}]   ;;  %s1847_s1 = inlined_call_operand.vmem [shape: f32[196,8], index: 1, kind: input, shape index: {}]   ;;  %s1848_s2 = inlined_call_operand.vmem [shape: f32[512,8], index: 2, kind: output, shape index: {0}]   ;;  %s1849_s3 = inlined_call_operand.hbm [shape: f32[2,1,8], index: 3, kind: output, shape index: {1}]   ;;  %s1850_s4 = inlined_call_operand.hbm [shape: f32[2,1,8], index: 4, kind: output, shape index: {2}]  }
   0x1   :  { %12 = vsyncpa [#allocation3 + $0x1], 0 }
   0x2   :  { %13 = vsyncpa [#allocation5], 0 }
   0x3   :  { %15 = vsyncpa [#allocation5 + $0x1], 0  ;;  %s1253_s15 = smov 0   ;;  %s1255_s16 = smov 0  }
   0x4   :  { %s1257_s17 = smov 0   ;;  %s1259_s18 = smov 0  }
   0x5 LB: > { %s1274_s19 = sadd.s32 4294967295, %s1223_s18   ;;  %s991_s20 = sadd.s32 4294967294, %s1223_s18   ;;  %s1223_s18 = sphi %s1259_s18, %s1856_s18   ;;  %s1219_s17 = sphi %s1257_s17, %s1855_s17   ;;  %s1215_s16 = sphi %s1255_s16, %s1854_s16   ;;  %s1211_s15 = sphi %s1253_s15, %s1853_s15  }
   0x6   : > { %s1278_s21 = sadd.s32 1, %s1223_s18   ;;  %s101_s22 = sadd.s32 1, %s1219_s17 }
   0x7   : > { %s98_s23 = ssub.s32 %s1223_s18, %s1278_s21  ;;  %p111_p0 = scmp.ne.s32.totalorder %s1219_s17, %s1215_s16 }
   0x8   : > { %p99_p1 = scmp.eq.s32.totalorder %s98_s23, 0  ;;  %p112_p2 = scmp.eq.s32.totalorder %s1274_s19, 1 }
   0x9   : > { %p117_p3 = scmp.ne.s32.totalorder %s1215_s16, %s1211_s15  ;;  %p118_p4 = scmp.eq.s32.totalorder %s991_s20, 1 }
   0xa   : > { %s1289_s24 = scalar_select %p99_p1, %s1219_s17, %s101_s22  }
   0xb   : > { %p1291_p5 = por %p112_p2, %p111_p0  ;;  %p1295_p6 = por %p118_p4, %p117_p3 }
   0xc   : > { %p994_p7 = scmp.ge.s32.totalorder %s1223_s18, 1  ;;  %p175_p8 = scmp.lt.s32.totalorder %s1223_s18, 3 }
   0xe   : > { %p176_p9 = pnand %p994_p7, %p175_p8 }
   0xf   : > { %s995_s5 = sshll.u32 (!%p176_p9), %s1274_s19, 5 }
  0x10   : > { %179 = sbr.rel (%p176_p9) target bundleno = 407 (0x197), region = 28  ;;  %p211_p10 = scmp.lt.s32.totalorder (!%p176_p9), %s995_s5, 63 }
  0x15   : > { %v302_v0 = vld [vmem:[%s1847_s1 + $0x78] sm:$0xff]  ;;  %v1225_v1 = vmov 0.0   ;;  %v301_v2 = vld [vmem:[%s1847_s1 + $0x70] sm:$0xff]  ;;  %v300_v3 = vld [vmem:[%s1847_s1 + $0x68] sm:$0xff]  ;;  %s1858_s5 = smov (!%p211_p10, %s995_s5), 63  ;;  %vm312_vm0 = vcmask 556032  }
  0x16   : > { %413 = vmatprep.subr.mxu0 %v1225_v1  ;;  %1038 = vmatprep.subr.mxu1 %v1225_v1  ;;  %v299_v4 = vld [vmem:[%s1847_s1 + $0x60] sm:$0xff]  ;;  %v298_v5 = vld [vmem:[%s1847_s1 + $0x58] sm:$0xff]  ;;  %v297_v6 = vld [vmem:[%s1847_s1 + $0x50] sm:$0xff]  ;;  %s1037_s22 = sshll.u32 %s1858_s5, 4  ;;  %vm409_vm1 = vcmask 1043456   ;;  %s999_s10 = sshll.u32 %s1858_s5, 3 }
  0x17   : > { %414 = vmatpush1.msra.mxu0 %v302_v0  ;;  %1063 = vmatpush1.msra.mxu1 %v302_v0  ;;  %v296_v7 = vld [vmem:[%s1847_s1 + $0x48] sm:$0xff]  ;;  %v295_v8 = vld [vmem:[%s1847_s1 + $0x40] sm:$0xff]  ;;  %v294_v9 = vld [vmem:[%s1847_s1 + $0x38] sm:$0xff]  ;;  %s1351_s7 = scalar_lea.vmem %s1846_s0, %s1037_s22  ;;  %s1535_s13 = scalar_lea.vmem %s1848_s2, %s999_s10  ;;  %vm638_vm2 = vcmask 64512   ;;  %vm740_vm3 = vcmask 57344  }
  0x18   : > { %415 = vmatprep.subr.mxu0 %v1225_v1  ;;  %1039 = vmatprep.subr.mxu1 %v1225_v1  ;;  %v293_v10 = vld [vmem:[%s1847_s1 + $0x30] sm:$0xff]  ;;  %v224_v11 = vld [vmem:[%s1351_s7 + $0x8] sm:$0xff]  ;;  %v291_v13 = vld [vmem:[%s1847_s1 + $0x20] sm:$0xff]  ;;  %s1762_s5 = sand.u32 1, %s1215_s16   ;;  %s1226_s10 = smov [#allocation2]  }
  0x19   : > { %416 = vmatpush1.msra.mxu0 %v301_v2  ;;  %1064 = vmatpush1.msra.mxu1 %v301_v2  ;;  %v292_v12 = vld [vmem:[%s1847_s1 + $0x28] sm:$0xff]  ;;  %v290_v14 = vld [vmem:[%s1847_s1 + $0x18] sm:$0xff]  ;;  %v289_v15 = vld [vmem:[%s1847_s1 + $0x10] sm:$0xff]  ;;  %s203_s14 = scalar_lea.vmem [#allocation2], %s1762_s5  ;;  %s209_s22 = scalar_lea.vmem [#allocation4], %s1762_s5 }
  0x1a   : > { %417 = vmatprep.subr.mxu0 %v1225_v1  ;;  %1040 = vmatprep.subr.mxu1 %v1225_v1  ;;  %v288_v16 = vld [vmem:[%s1847_s1 + $0x8] sm:$0xff]  ;;  %v287_v17 = vld [vmem:[%s1847_s1] sm:$0xff]  ;;  %v310_v19 = vld [vmem:[%s1847_s1 + $0xb8] sm:$0xff]  ;;  %s870_s20 = sshll.u32 %s203_s14, 4  ;;  %s883_s23 = sshll.u32 %s209_s22, 4  ;;  %s1774_s20 = int_to_ptr.vmem [resolvable:$true] %s870_s20  ;;  %s1782_s23 = int_to_ptr.vmem [resolvable:$true] %s883_s23 }
  0x1b   : > { %418 = vmatpush1.msra.mxu0 %v300_v3  ;;  %1065 = vmatpush1.msra.mxu1 %v300_v3  ;;  %v311_v18 = vld [vmem:[%s1847_s1 + $0xc0] sm:$0xf]  ;;  %v309_v20 = vld [vmem:[%s1847_s1 + $0xb0] sm:$0xff]  ;;  %v308_v21 = vld [vmem:[%s1847_s1 + $0xa8] sm:$0xff]  ;;  %s850_s8 = scalar_lea.sflag [#allocation3], %s1762_s5  ;;  %s1133_s9 = scalar_lea.vmem %s1774_s20, 16 }
  0x1c   : > { %419 = vmatprep.subr.mxu0 %v1225_v1  ;;  %1041 = vmatprep.subr.mxu1 %v1225_v1  ;;  %v307_v22 = vld [vmem:[%s1847_s1 + $0xa0] sm:$0xff]  ;;  %v306_v23 = vld [vmem:[%s1847_s1 + $0x98] sm:$0xff]  ;;  %v305_v24 = vld [vmem:[%s1847_s1 + $0x90] sm:$0xff]  ;;  %p1134_p11 = scmp.ne.s32.totalorder %s1774_s20, %s1133_s9  ;;  %s1137_s11 = sshll.u32 %s1226_s10, 4  ;;  %s1138_s11 = int_to_ptr.vmem [resolvable:$false] %s1137_s11 }
  0x1d   : > { %420 = vmatpush1.msra.mxu0 %v299_v4  ;;  %1066 = vmatpush1.msra.mxu1 %v299_v4  ;;  %v304_v25 = vld [vmem:[%s1847_s1 + $0x88] sm:$0xff]  ;;  %v303_v26 = vld [vmem:[%s1847_s1 + $0x80] sm:$0xff]  ;;  %v226_v28 = vld [vmem:[%s1351_s7 + $0x18] sm:$0xff]  ;;  %s1139_s12 = scalar_lea.vmem %s1138_s11, 32  ;;  %p1140_p0 = scmp.lt.s32.totalorder %s1774_s20, %s1138_s11 }
  0x1e   : > { %421 = vmatprep.subr.mxu0 %v1225_v1  ;;  %1042 = vmatprep.subr.mxu1 %v1225_v1  ;;  %v223_v27 = vld [vmem:[%s1351_s7] sm:$0xff]  ;;  %v256_v29 = vld [vmem:[%s1351_s7 + $0x108] sm:$0xff]  ;;  %v258_v31 = vld [vmem:[%s1351_s7 + $0x118] sm:$0xff]  ;;  %p1135_p12 = pnand %p1134_p11, %p1291_p5  ;;  %p1141_p1 = scmp.lt.s32.totalorder %s1139_s12, %s1133_s9 }
  0x1f   : > { %422 = vmatpush1.msra.mxu0 %v298_v5  ;;  %1067 = vmatpush1.msra.mxu1 %v298_v5  ;;  %v255_v30 = vld [vmem:[%s1351_s7 + $0x100] sm:$0xff]  ;;  %v225_v32 = vld [vmem:[%s1351_s7 + $0x10] sm:$0xff]  ;;  %v228_v33 = vld [vmem:[%s1351_s7 + $0x28] sm:$0xff] }
  0x20   : > { %423 = vmatprep.subr.mxu0 %v1225_v1  ;;  %1043 = vmatprep.subr.mxu1 %v1225_v1  ;;  %v257_v34 = vld [vmem:[%s1351_s7 + $0x110] sm:$0xff]  ;;  %v260_v35 = vld [vmem:[%s1351_s7 + $0x128] sm:$0xff]  ;;  %v227_v36 = vld [vmem:[%s1351_s7 + $0x20] sm:$0xff]  ;;  %p1136_p13 = pneg %p1135_p12  ;;  %p1142_p2 = por %p1141_p1, %p1140_p0 }
  0x21   : > { %424 = vmatpush1.msra.mxu0 %v297_v6  ;;  %1068 = vmatpush1.msra.mxu1 %v297_v6  ;;  %v230_v37 = vld [vmem:[%s1351_s7 + $0x38] sm:$0xff]  ;;  %v259_v38 = vld [vmem:[%s1351_s7 + $0x120] sm:$0xff]  ;;  %v229_v40 = vld [vmem:[%s1351_s7 + $0x30] sm:$0xff] }
  0x22   : > { %425 = vmatprep.subr.mxu0 %v1225_v1  ;;  %1044 = vmatprep.subr.mxu1 %v1225_v1  ;;  %v262_v39 = vld [vmem:[%s1351_s7 + $0x138] sm:$0xff]  ;;  %v232_v41 = vld [vmem:[%s1351_s7 + $0x48] sm:$0xff]  ;;  %v261_v42 = vld [vmem:[%s1351_s7 + $0x130] sm:$0xff]  ;;  %p1143_p3 = pnand %p1142_p2, %p1136_p13 }
  0x23   : > { %426 = vmatpush1.msra.mxu0 %v296_v7  ;;  %1069 = vmatpush1.msra.mxu1 %v296_v7  ;;  %v264_v43 = vld [vmem:[%s1351_s7 + $0x148] sm:$0xff]  ;;  %v231_v44 = vld [vmem:[%s1351_s7 + $0x40] sm:$0xff]  ;;  %v234_v45 = vld [vmem:[%s1351_s7 + $0x58] sm:$0xff] }
  0x24   : > { %427 = vmatprep.subr.mxu0 %v1225_v1  ;;  %1045 = vmatprep.subr.mxu1 %v1225_v1  ;;  %v263_v46 = vld [vmem:[%s1351_s7 + $0x140] sm:$0xff]  ;;  %v266_v47 = vld [vmem:[%s1351_s7 + $0x158] sm:$0xff]  ;;  %v233_v48 = vld [vmem:[%s1351_s7 + $0x50] sm:$0xff] }
  0x25   : > { %428 = vmatpush1.msra.mxu0 %v295_v8  ;;  %1070 = vmatpush1.msra.mxu1 %v295_v8  ;;  %v236_v49 = vld [vmem:[%s1351_s7 + $0x68] sm:$0xff]  ;;  %v265_v50 = vld [vmem:[%s1351_s7 + $0x150] sm:$0xff]  ;;  %v235_v52 = vld [vmem:[%s1351_s7 + $0x60] sm:$0xff] }
  0x26   : > { %429 = vmatprep.subr.mxu0 %v1225_v1  ;;  %1046 = vmatprep.subr.mxu1 %v1225_v1  ;;  %v268_v51 = vld [vmem:[%s1351_s7 + $0x168] sm:$0xff]  ;;  %v238_v53 = vld [vmem:[%s1351_s7 + $0x78] sm:$0xff]  ;;  %v267_v54 = vld [vmem:[%s1351_s7 + $0x160] sm:$0xff] }
  0x27   : > { %430 = vmatpush1.msra.mxu0 %v294_v9  ;;  %1071 = vmatpush1.msra.mxu1 %v294_v9  ;;  %v270_v55 = vld [vmem:[%s1351_s7 + $0x178] sm:$0xff]  ;;  %v237_v56 = vld [vmem:[%s1351_s7 + $0x70] sm:$0xff]  ;;  %v240_v57 = vld [vmem:[%s1351_s7 + $0x88] sm:$0xff] }
  0x28   : > { %431 = vmatprep.subr.mxu0 %v1225_v1  ;;  %1047 = vmatprep.subr.mxu1 %v1225_v1  ;;  %v269_v58 = vld [vmem:[%s1351_s7 + $0x170] sm:$0xff]  ;;  %v272_v59 = vld [vmem:[%s1351_s7 + $0x188] sm:$0xff]  ;;  %v239_v60 = vld [vmem:[%s1351_s7 + $0x80] sm:$0xff] }
  0x29   : > { %432 = vmatpush1.msra.mxu0 %v293_v10  ;;  %1072 = vmatpush1.msra.mxu1 %v293_v10  ;;  %v242_v61 = vld [vmem:[%s1351_s7 + $0x98] sm:$0xff]  ;;  %v271_v62 = vld [vmem:[%s1351_s7 + $0x180] sm:$0xff]  ;;  %v241_v0 = vld [vmem:[%s1351_s7 + $0x90] sm:$0xff] }
  0x2a   : > { %433 = vmatprep.subr.mxu0 %v1225_v1  ;;  %1001 = vmatprep.mubr.msk.f32.mxu0 %vm312_vm0, %v224_v11  ;;  %v274_v63 = vld [vmem:[%s1351_s7 + $0x198] sm:$0xff]  ;;  %v273_v2 = vld [vmem:[%s1351_s7 + $0x190] sm:$0xff]  ;;  %v276_v3 = vld [vmem:[%s1351_s7 + $0x1a8] sm:$0xff] }
  0x2b   : > { %434 = vmatpush1.msra.mxu0 %v292_v12  ;;  %1048 = vmatprep.subr.mxu1 %v1225_v1  ;;  %v243_v4 = vld [vmem:[%s1351_s7 + $0xa0] sm:$0xff]  ;;  %v246_v5 = vld [vmem:[%s1351_s7 + $0xb8] sm:$0xff]  ;;  %v245_v8 = vld [vmem:[%s1351_s7 + $0xb0] sm:$0xff] }
  0x2c   : > { %435 = vmatprep.subr.mxu0 %v1225_v1  ;;  %1073 = vmatpush1.msra.mxu1 %v292_v12  ;;  %v275_v6 = vld [vmem:[%s1351_s7 + $0x1a0] sm:$0xff]  ;;  %v278_v7 = vld [vmem:[%s1351_s7 + $0x1b8] sm:$0xff]  ;;  %v248_v9 = vld [vmem:[%s1351_s7 + $0xc8] sm:$0xff] }
  0x2d   : > { %436 = vmatpush1.msra.mxu0 %v291_v13  ;;  %1049 = vmatprep.subr.mxu1 %v1225_v1  ;;  %v277_v10 = vld [vmem:[%s1351_s7 + $0x1b0] sm:$0xff]  ;;  %v280_v11 = vld [vmem:[%s1351_s7 + $0x1c8] sm:$0xff]  ;;  %v247_v12 = vld [vmem:[%s1351_s7 + $0xc0] sm:$0xff] }
  0x2e   : > { %437 = vmatprep.subr.mxu0 %v1225_v1  ;;  %1074 = vmatpush1.msra.mxu1 %v291_v13  ;;  %v250_v13 = vld [vmem:[%s1351_s7 + $0xd8] sm:$0xff] }
  0x2f   : > { %438 = vmatpush1.msra.mxu0 %v290_v14  ;;  %1050 = vmatprep.subr.mxu1 %v1225_v1 }
  0x30   : > { %439 = vmatprep.subr.mxu0 %v1225_v1  ;;  %1075 = vmatpush1.msra.mxu1 %v290_v14  ;;  %v279_v14 = vld [vmem:[%s1351_s7 + $0x1c0] sm:$0xff] }
  0x31   : > { %440 = vmatpush1.msra.mxu0 %v289_v15  ;;  %1051 = vmatprep.subr.mxu1 %v1225_v1 }
  0x32   : > { %441 = vmatprep.subr.mxu0 %v1225_v1  ;;  %1076 = vmatpush1.msra.mxu1 %v289_v15  ;;  %v282_v15 = vld [vmem:[%s1351_s7 + $0x1d8] sm:$0xff] }
  0x33   : > { %442 = vmatpush1.msra.mxu0 %v288_v16  ;;  %1052 = vmatprep.subr.mxu1 %v1225_v1 }
  0x34   : > { %443 = vmatprep.subr.mxu0 %v1225_v1  ;;  %1077 = vmatpush1.msra.mxu1 %v288_v16  ;;  %v249_v16 = vld [vmem:[%s1351_s7 + $0xd0] sm:$0xff] }
  0x35   : > { %444 = vmatpush1.msra.mxu0 %v287_v17  ;;  %1053 = vmatprep.subr.mxu1 %v1225_v1 }
  0x36   : > { %459 = vmatprep.subr.mxu0 %v1225_v1  ;;  %1078 = vmatpush1.msra.mxu1 %v287_v17  ;;  %v252_v17 = vld [vmem:[%s1351_s7 + $0xe8] sm:$0xff] }
  0x37   : > { %1000 = vmatpush2.msk.msra.mxu0 %vm409_vm1, %v311_v18  ;;  %1054 = vmatprep.subr.mxu1 %v1225_v1 }
  0x38   : > { %461 = vmatprep.subr.mxu0 %v1225_v1  ;;  %1079 = vmatpush2.msk.msra.mxu1 %vm409_vm1, %v311_v18  ;;  %v281_v18 = vld [vmem:[%s1351_s7 + $0x1d0] sm:$0xff] }
  0x39   : > { %462 = vmatpush2.msra.mxu0 %v310_v19  ;;  %1055 = vmatprep.subr.mxu1 %v1225_v1 }
  0x3a   : > { %463 = vmatprep.subr.mxu0 %v1225_v1  ;;  %1080 = vmatpush2.msra.mxu1 %v310_v19  ;;  %v284_v19 = vld [vmem:[%s1351_s7 + $0x1e8] sm:$0xff] }
  0x3b   : > { %464 = vmatpush2.msra.mxu0 %v309_v20  ;;  %1056 = vmatprep.subr.mxu1 %v1225_v1 }
  0x3c   : > { %465 = vmatprep.subr.mxu0 %v1225_v1  ;;  %1081 = vmatpush2.msra.mxu1 %v309_v20  ;;  %v251_v20 = vld [vmem:[%s1351_s7 + $0xe0] sm:$0xff] }
  0x3d   : > { %466 = vmatpush2.msra.mxu0 %v308_v21  ;;  %1057 = vmatprep.subr.mxu1 %v1225_v1 }
  0x3e   : > { %467 = vmatprep.subr.mxu0 %v1225_v1  ;;  %1082 = vmatpush2.msra.mxu1 %v308_v21  ;;  %v254_v21 = vld [vmem:[%s1351_s7 + $0xf8] sm:$0xff] }
  0x3f   : > { %468 = vmatpush2.msra.mxu0 %v307_v22  ;;  %1058 = vmatprep.subr.mxu1 %v1225_v1 }
  0x40   : > { %469 = vmatprep.subr.mxu0 %v1225_v1  ;;  %1083 = vmatpush2.msra.mxu1 %v307_v22  ;;  %v283_v22 = vld [vmem:[%s1351_s7 + $0x1e0] sm:$0xff] }
  0x41   : > { %470 = vmatpush2.msra.mxu0 %v306_v23  ;;  %1059 = vmatprep.subr.mxu1 %v1225_v1 }
  0x42   : > { %471 = vmatprep.subr.mxu0 %v1225_v1  ;;  %1084 = vmatpush2.msra.mxu1 %v306_v23  ;;  %v286_v23 = vld [vmem:[%s1351_s7 + $0x1f8] sm:$0xff] }
  0x43   : > { %472 = vmatpush2.msra.mxu0 %v305_v24  ;;  %1060 = vmatprep.subr.mxu1 %v1225_v1 }
  0x44   : > { %473 = vmatprep.subr.mxu0 %v1225_v1  ;;  %1085 = vmatpush2.msra.mxu1 %v305_v24  ;;  %v253_v24 = vld [vmem:[%s1351_s7 + $0xf0] sm:$0xff] }
  0x45   : > { %474 = vmatpush2.msra.mxu0 %v304_v25  ;;  %1061 = vmatprep.subr.mxu1 %v1225_v1 }
  0x46   : > { %475 = vmatprep.subr.mxu0 %v1225_v1  ;;  %1086 = vmatpush2.msra.mxu1 %v304_v25  ;;  %v285_v25 = vld [vmem:[%s1351_s7 + $0x1f0] sm:$0xff] }
  0x47   : > { %476 = vmatpush2.msra.mxu0 %v303_v26  ;;  %1062 = vmatprep.subr.mxu1 %v1225_v1  ;;  %v244_v1 = vld [vmem:[%s1351_s7 + $0xa8] sm:$0xff]  ;;  %s1033_s7 = sshll.u32 %s1274_s19, 4 }
  0x48   : > { %478 = vmatmul.mubr.f32.vlgmr.msra.gmra.mxu0 %v223_v27  ;;  %1087 = vmatpush2.msra.mxu1 %v303_v26  ;;  %s1772_s29 = scalar_lea.hbm %s1849_s3, %s1033_s7  ;;  %s1780_s6 = scalar_lea.hbm %s1850_s4, %s1033_s7 }
  0x49   : > { %1002 = vmatprep.mubr.msk.f32.mxu0 %vm312_vm0, %v226_v28  ;;  %1017 = vmatprep.mubr.msk.f32.mxu1 %vm312_vm0, %v256_v29 }
  0x4a   : > { %558 = vmatmul.mubr.f32.vlgmr.msra.gmra.mxu1 %v255_v30 }
  0x4b   : > { %1018 = vmatprep.mubr.msk.f32.mxu1 %vm312_vm0, %v258_v31 }
  0x4c   : > { %483 = vmatmul.mubr.f32.gmra.mxu0 %v225_v32 }
  0x4d   : > { %1003 = vmatprep.mubr.msk.f32.mxu0 %vm312_vm0, %v228_v33 }
  0x4e   : > { %563 = vmatmul.mubr.f32.gmra.mxu1 %v257_v34 }
  0x4f   : > { %1019 = vmatprep.mubr.msk.f32.mxu1 %vm312_vm0, %v260_v35 }
  0x50   : > { %488 = vmatmul.mubr.f32.gmra.mxu0 %v227_v36 }
  0x51   : > { %1004 = vmatprep.mubr.msk.f32.mxu0 %vm312_vm0, %v230_v37 }
  0x52   : > { %568 = vmatmul.mubr.f32.gmra.mxu1 %v259_v38 }
  0x53   : > { %1020 = vmatprep.mubr.msk.f32.mxu1 %vm312_vm0, %v262_v39 }
  0x54   : > { %493 = vmatmul.mubr.f32.gmra.mxu0 %v229_v40 }
  0x55   : > { %1005 = vmatprep.mubr.msk.f32.mxu0 %vm312_vm0, %v232_v41 }
  0x56   : > { %573 = vmatmul.mubr.f32.gmra.mxu1 %v261_v42 }
  0x57   : > { %1021 = vmatprep.mubr.msk.f32.mxu1 %vm312_vm0, %v264_v43 }
  0x58   : > { %498 = vmatmul.mubr.f32.gmra.mxu0 %v231_v44 }
  0x59   : > { %1006 = vmatprep.mubr.msk.f32.mxu0 %vm312_vm0, %v234_v45 }
  0x5a   : > { %578 = vmatmul.mubr.f32.gmra.mxu1 %v263_v46 }
  0x5b   : > { %1022 = vmatprep.mubr.msk.f32.mxu1 %vm312_vm0, %v266_v47 }
  0x5c   : > { %503 = vmatmul.mubr.f32.gmra.mxu0 %v233_v48 }
  0x5d   : > { %1007 = vmatprep.mubr.msk.f32.mxu0 %vm312_vm0, %v236_v49 }
  0x5e   : > { %583 = vmatmul.mubr.f32.gmra.mxu1 %v265_v50 }
  0x5f   : > { %1023 = vmatprep.mubr.msk.f32.mxu1 %vm312_vm0, %v268_v51 }
  0x60   : > { %508 = vmatmul.mubr.f32.gmra.mxu0 %v235_v52 }
  0x61   : > { %1008 = vmatprep.mubr.msk.f32.mxu0 %vm312_vm0, %v238_v53 }
  0x62   : > { %588 = vmatmul.mubr.f32.gmra.mxu1 %v267_v54 }
  0x63   : > { %1024 = vmatprep.mubr.msk.f32.mxu1 %vm312_vm0, %v270_v55 }
  0x64   : > { %513 = vmatmul.mubr.f32.gmra.mxu0 %v237_v56 }
  0x65   : > { %1009 = vmatprep.mubr.msk.f32.mxu0 %vm312_vm0, %v240_v57 }
  0x66   : > { %593 = vmatmul.mubr.f32.gmra.mxu1 %v269_v58 }
  0x67   : > { %1025 = vmatprep.mubr.msk.f32.mxu1 %vm312_vm0, %v272_v59 }
  0x68   : > { %518 = vmatmul.mubr.f32.gmra.mxu0 %v239_v60 }
  0x69   : > { %1010 = vmatprep.mubr.msk.f32.mxu0 %vm312_vm0, %v242_v61 }
  0x6a   : > { %598 = vmatmul.mubr.f32.gmra.mxu1 %v271_v62 }
  0x6b   : > { %1026 = vmatprep.mubr.msk.f32.mxu1 %vm312_vm0, %v274_v63 }
  0x6c   : > { %523 = vmatmul.mubr.f32.gmra.mxu0 %v241_v0 }
  0x6d   : > { %1011 = vmatprep.mubr.msk.f32.mxu0 %vm312_vm0, %v244_v1 }
  0x6e   : > { %603 = vmatmul.mubr.f32.gmra.mxu1 %v273_v2 }
  0x6f   : > { %1027 = vmatprep.mubr.msk.f32.mxu1 %vm312_vm0, %v276_v3 }
  0x70   : > { %528 = vmatmul.mubr.f32.gmra.mxu0 %v243_v4 }
  0x71   : > { %1012 = vmatprep.mubr.msk.f32.mxu0 %vm312_vm0, %v246_v5 }
  0x72   : > { %608 = vmatmul.mubr.f32.gmra.mxu1 %v275_v6 }
  0x73   : > { %1028 = vmatprep.mubr.msk.f32.mxu1 %vm312_vm0, %v278_v7 }
  0x74   : > { %533 = vmatmul.mubr.f32.gmra.mxu0 %v245_v8 }
  0x75   : > { %1013 = vmatprep.mubr.msk.f32.mxu0 %vm312_vm0, %v248_v9 }
  0x76   : > { %613 = vmatmul.mubr.f32.gmra.mxu1 %v277_v10 }
  0x77   : > { %1029 = vmatprep.mubr.msk.f32.mxu1 %vm312_vm0, %v280_v11 }
  0x78   : > { %538 = vmatmul.mubr.f32.gmra.mxu0 %v247_v12 }
  0x79   : > { %1014 = vmatprep.mubr.msk.f32.mxu0 %vm312_vm0, %v250_v13 }
  0x7a   : > { %618 = vmatmul.mubr.f32.gmra.mxu1 %v279_v14 }
  0x7b   : > { %1030 = vmatprep.mubr.msk.f32.mxu1 %vm312_vm0, %v282_v15 }
  0x7c   : > { %543 = vmatmul.mubr.f32.gmra.mxu0 %v249_v16 }
  0x7d   : > { %1015 = vmatprep.mubr.msk.f32.mxu0 %vm312_vm0, %v252_v17 }
  0x7e   : > { %623 = vmatmul.mubr.f32.gmra.mxu1 %v281_v18 }
  0x7f   : > { %1031 = vmatprep.mubr.msk.f32.mxu1 %vm312_vm0, %v284_v19 }
  0x80   : > { %548 = vmatmul.mubr.f32.gmra.mxu0 %v251_v20 }
  0x81   : > { %1016 = vmatprep.mubr.msk.f32.mxu0 %vm312_vm0, %v254_v21 }
  0x82   : > { %628 = vmatmul.mubr.f32.gmra.mxu1 %v283_v22 }
  0x83   : > { %1032 = vmatprep.mubr.msk.f32.mxu1 %vm312_vm0, %v286_v23 }
  0x84   : > { %553 = vmatmul.mubr.f32.gmra.mxu0 %v253_v24 }
  0x86   : > { %633 = vmatmul.mubr.f32.gmra.mxu1 %v285_v25 }
 0x108   : > { %v479_v26 = vpop.f32.mrf.mxu0 }
 0x109   : > { %639 = vst.msk [vmem:[%s1535_s13] sm:$0xff] %vm638_vm2, %v479_v26  ;;  %v742_v58 = vmul.f32 %v479_v26, %v479_v26  ;;  %v671_v63 = vsel %vm638_vm2, %v479_v26, 0.0 }
 0x10a   : > { %v481_v27 = vpop.f32.mrf.mxu0  ;;  %v1539_v28 = vpop.f32.mrf.mxu1 }
 0x10b   : > { %655 = vst.msk [vmem:[%s1535_s13 + $0x80] sm:$0xff] %vm638_vm2, %v1539_v28  ;;  %v774_v6 = vsel %vm638_vm2, %v742_v58, 0.0 }
 0x10c   : > { %v484_v29 = vpop.f32.mrf.mxu0  ;;  %v561_v30 = vpop.f32.mrf.mxu1 }
 0x10d   : > { %640 = vst.msk [vmem:[%s1535_s13 + $0x8] sm:$0xff] %vm638_vm2, %v484_v29  ;;  %v743_v55 = vmul.f32 %v484_v29, %v484_v29  ;;  %v672_v59 = vsel %vm638_vm2, %v484_v29, 0.0 }
 0x10e   : > { %v486_v31 = vpop.f32.mrf.mxu0  ;;  %v1546_v32 = vpop.f32.mrf.mxu1  ;;  %v673_v3 = vadd.f32 %v672_v59, %v671_v63 }
 0x10f   : > { %656 = vst.msk [vmem:[%s1535_s13 + $0x88] sm:$0xff] %vm638_vm2, %v1546_v32  ;;  %v775_v0 = vsel %vm638_vm2, %v743_v55, 0.0 }
 0x110   : > { %v489_v33 = vpop.f32.mrf.mxu0  ;;  %v566_v34 = vpop.f32.mrf.mxu1  ;;  %v776_v10 = vadd.f32 %v775_v0, %v774_v6 }
 0x111   : > { %641 = vst.msk [vmem:[%s1535_s13 + $0x10] sm:$0xff] %vm638_vm2, %v489_v33  ;;  %v744_v60 = vmul.f32 %v489_v33, %v489_v33  ;;  %v674_v1 = vsel %vm638_vm2, %v489_v33, 0.0 }
 0x112   : > { %v491_v35 = vpop.f32.mrf.mxu0  ;;  %v1553_v36 = vpop.f32.mrf.mxu1  ;;  %v675_v11 = vadd.f32 %v674_v1, %v673_v3 }
 0x113   : > { %657 = vst.msk [vmem:[%s1535_s13 + $0x90] sm:$0xff] %vm638_vm2, %v1553_v36  ;;  %v777_v7 = vsel %vm638_vm2, %v744_v60, 0.0 }
 0x114   : > { %v494_v37 = vpop.f32.mrf.mxu0  ;;  %v571_v38 = vpop.f32.mrf.mxu1  ;;  %v778_v17 = vadd.f32 %v777_v7, %v776_v10 }
 0x115   : > { %642 = vst.msk [vmem:[%s1535_s13 + $0x18] sm:$0xff] %vm638_vm2, %v494_v37  ;;  %v745_v2 = vmul.f32 %v494_v37, %v494_v37  ;;  %v676_v8 = vsel %vm638_vm2, %v494_v37, 0.0 }
 0x116   : > { %v496_v39 = vpop.f32.mrf.mxu0  ;;  %v1560_v40 = vpop.f32.mrf.mxu1  ;;  %v677_v18 = vadd.f32 %v676_v8, %v675_v11 }
 0x117   : > { %658 = vst.msk [vmem:[%s1535_s13 + $0x98] sm:$0xff] %vm638_vm2, %v1560_v40  ;;  %v779_v14 = vsel %vm638_vm2, %v745_v2, 0.0 }
 0x118   : > { %v499_v41 = vpop.f32.mrf.mxu0  ;;  %v576_v42 = vpop.f32.mrf.mxu1  ;;  %v780_v24 = vadd.f32 %v779_v14, %v778_v17 }
 0x119   : > { %643 = vst.msk [vmem:[%s1535_s13 + $0x20] sm:$0xff] %vm638_vm2, %v499_v41  ;;  %v746_v9 = vmul.f32 %v499_v41, %v499_v41  ;;  %v678_v15 = vsel %vm638_vm2, %v499_v41, 0.0 }
 0x11a   : > { %v501_v43 = vpop.f32.mrf.mxu0  ;;  %v1567_v44 = vpop.f32.mrf.mxu1  ;;  %v679_v25 = vadd.f32 %v678_v15, %v677_v18 }
 0x11b   : > { %659 = vst.msk [vmem:[%s1535_s13 + $0xa0] sm:$0xff] %vm638_vm2, %v1567_v44  ;;  %v781_v21 = vsel %vm638_vm2, %v746_v9, 0.0 }
 0x11c   : > { %v504_v45 = vpop.f32.mrf.mxu0  ;;  %v581_v46 = vpop.f32.mrf.mxu1  ;;  %v782_v33 = vadd.f32 %v781_v21, %v780_v24 }
 0x11d   : > { %644 = vst.msk [vmem:[%s1535_s13 + $0x28] sm:$0xff] %vm638_vm2, %v504_v45  ;;  %v747_v16 = vmul.f32 %v504_v45, %v504_v45  ;;  %v680_v22 = vsel %vm638_vm2, %v504_v45, 0.0 }
 0x11e   : > { %v506_v47 = vpop.f32.mrf.mxu0  ;;  %v1574_v48 = vpop.f32.mrf.mxu1  ;;  %v681_v34 = vadd.f32 %v680_v22, %v679_v25 }
 0x11f   : > { %660 = vst.msk [vmem:[%s1535_s13 + $0xa8] sm:$0xff] %vm638_vm2, %v1574_v48  ;;  %v783_v29 = vsel %vm638_vm2, %v747_v16, 0.0 }
 0x120   : > { %v509_v49 = vpop.f32.mrf.mxu0  ;;  %v586_v50 = vpop.f32.mrf.mxu1  ;;  %v784_v42 = vadd.f32 %v783_v29, %v782_v33 }
 0x121   : > { %645 = vst.msk [vmem:[%s1535_s13 + $0x30] sm:$0xff] %vm638_vm2, %v509_v49  ;;  %v748_v23 = vmul.f32 %v509_v49, %v509_v49  ;;  %v682_v30 = vsel %vm638_vm2, %v509_v49, 0.0 }
 0x122   : > { %v511_v51 = vpop.f32.mrf.mxu0  ;;  %v1581_v52 = vpop.f32.mrf.mxu1  ;;  %v683_v43 = vadd.f32 %v682_v30, %v681_v34 }
 0x123   : > { %661 = vst.msk [vmem:[%s1535_s13 + $0xb0] sm:$0xff] %vm638_vm2, %v1581_v52  ;;  %v785_v38 = vsel %vm638_vm2, %v748_v23, 0.0 }
 0x124   : > { %v514_v53 = vpop.f32.mrf.mxu0  ;;  %v591_v54 = vpop.f32.mrf.mxu1  ;;  %v786_v51 = vadd.f32 %v785_v38, %v784_v42 }
 0x125   : > { %646 = vst.msk [vmem:[%s1535_s13 + $0x38] sm:$0xff] %vm638_vm2, %v514_v53  ;;  %v749_v31 = vmul.f32 %v514_v53, %v514_v53  ;;  %v684_v39 = vsel %vm638_vm2, %v514_v53, 0.0 }
 0x126   : > { %v516_v56 = vpop.f32.mrf.mxu0  ;;  %v1588_v57 = vpop.f32.mrf.mxu1  ;;  %v685_v54 = vadd.f32 %v684_v39, %v683_v43 }
 0x127   : > { %662 = vst.msk [vmem:[%s1535_s13 + $0xb8] sm:$0xff] %vm638_vm2, %v1588_v57  ;;  %v787_v47 = vsel %vm638_vm2, %v749_v31, 0.0 }
 0x128   : > { %v519_v61 = vpop.f32.mrf.mxu0  ;;  %v596_v62 = vpop.f32.mrf.mxu1  ;;  %v788_v60 = vadd.f32 %v787_v47, %v786_v51  ;;  %v758_v47 = vmul.f32 %v1539_v28, %v1539_v28 }
 0x129   : > { %647 = vst.msk [vmem:[%s1535_s13 + $0x40] sm:$0xff] %vm638_vm2, %v519_v61  ;;  %v750_v41 = vmul.f32 %v519_v61, %v519_v61  ;;  %v686_v49 = vsel %vm638_vm2, %v519_v61, 0.0 }
 0x12a   : > { %v521_v4 = vpop.f32.mrf.mxu0  ;;  %v1599_v5 = vpop.f32.mrf.mxu1  ;;  %v687_v61 = vadd.f32 %v686_v49, %v685_v54 }
 0x12b   : > { %663 = vst.msk [vmem:[%s1535_s13 + $0xc0] sm:$0xff] %vm638_vm2, %v1599_v5  ;;  %v789_v56 = vsel %vm638_vm2, %v750_v41, 0.0 }
 0x12c   : > { %v524_v12 = vpop.f32.mrf.mxu0  ;;  %v601_v13 = vpop.f32.mrf.mxu1  ;;  %v790_v3 = vadd.f32 %v789_v56, %v788_v60 }
 0x12d   : > { %648 = vst.msk [vmem:[%s1535_s13 + $0x48] sm:$0xff] %vm638_vm2, %v524_v12  ;;  %v751_v50 = vmul.f32 %v524_v12, %v524_v12  ;;  %v688_v58 = vsel %vm638_vm2, %v524_v12, 0.0 }
 0x12e   : > { %v526_v19 = vpop.f32.mrf.mxu0  ;;  %v1611_v20 = vpop.f32.mrf.mxu1  ;;  %v689_v4 = vadd.f32 %v688_v58, %v687_v61  ;;  %v702_v58 = vsel %vm638_vm2, %v1539_v28, 0.0 }
 0x12f   : > { %664 = vst.msk [vmem:[%s1535_s13 + $0xc8] sm:$0xff] %vm638_vm2, %v1611_v20  ;;  %v791_v0 = vsel %vm638_vm2, %v751_v50, 0.0 }
 0x130   : > { %v529_v26 = vpop.f32.mrf.mxu0  ;;  %v606_v27 = vpop.f32.mrf.mxu1  ;;  %v792_v11 = vadd.f32 %v791_v0, %v790_v3  ;;  %v805_v0 = vsel %vm638_vm2, %v758_v47, 0.0 }
 0x131   : > { %649 = vst.msk [vmem:[%s1535_s13 + $0x50] sm:$0xff] %vm638_vm2, %v529_v26  ;;  %v752_v59 = vmul.f32 %v529_v26, %v529_v26  ;;  %v690_v1 = vsel %vm638_vm2, %v529_v26, 0.0 }
 0x132   : > { %v531_v35 = vpop.f32.mrf.mxu0  ;;  %v1622_v37 = vpop.f32.mrf.mxu1  ;;  %v691_v12 = vadd.f32 %v690_v1, %v689_v4  ;;  %v704_v1 = vsel %vm638_vm2, %v1546_v32, 0.0 }
 0x133   : > { %665 = vst.msk [vmem:[%s1535_s13 + $0xd0] sm:$0xff] %vm638_vm2, %v1622_v37  ;;  %v793_v8 = vsel %vm638_vm2, %v752_v59, 0.0  ;;  %v759_v59 = vmul.f32 %v1546_v32, %v1546_v32  ;;  %v708_v32 = vsel %vm638_vm2, %v1560_v40, 0.0 }
 0x134   : > { %v534_v45 = vpop.f32.mrf.mxu0  ;;  %v611_v46 = vpop.f32.mrf.mxu1  ;;  %v794_v18 = vadd.f32 %v793_v8, %v792_v11  ;;  %v761_v8 = vmul.f32 %v1560_v40, %v1560_v40  ;;  %v712_v40 = vsel %vm638_vm2, %v1574_v48, 0.0 }
 0x135   : > { %650 = vst.msk [vmem:[%s1535_s13 + $0x58] sm:$0xff] %vm638_vm2, %v534_v45  ;;  %v753_v2 = vmul.f32 %v534_v45, %v534_v45  ;;  %v692_v9 = vsel %vm638_vm2, %v534_v45, 0.0  ;;  %v807_v4 = vsel %vm638_vm2, %v759_v59, 0.0 }
 0x136   : > { %v536_v53 = vpop.f32.mrf.mxu0  ;;  %v1633_v55 = vpop.f32.mrf.mxu1  ;;  %v693_v19 = vadd.f32 %v692_v9, %v691_v12  ;;  %v762_v12 = vmul.f32 %v1567_v44, %v1567_v44 }
 0x137   : > { %666 = vst.msk [vmem:[%s1535_s13 + $0xd8] sm:$0xff] %vm638_vm2, %v1633_v55  ;;  %v795_v15 = vsel %vm638_vm2, %v753_v2, 0.0  ;;  %v760_v2 = vmul.f32 %v1553_v36, %v1553_v36 }
 0x138   : > { %v539_v62 = vpop.f32.mrf.mxu0  ;;  %v616_v63 = vpop.f32.mrf.mxu1  ;;  %v796_v25 = vadd.f32 %v795_v15, %v794_v18  ;;  %v811_v15 = vsel %vm638_vm2, %v761_v8, 0.0 }
 0x139   : > { %651 = vst.msk [vmem:[%s1535_s13 + $0x60] sm:$0xff] %vm638_vm2, %v539_v62  ;;  %v754_v10 = vmul.f32 %v539_v62, %v539_v62  ;;  %v694_v16 = vsel %vm638_vm2, %v539_v62, 0.0  ;;  %v809_v11 = vsel %vm638_vm2, %v760_v2, 0.0 }
 0x13a   : > { %v541_v6 = vpop.f32.mrf.mxu0  ;;  %v1644_v7 = vpop.f32.mrf.mxu1  ;;  %v695_v26 = vadd.f32 %v694_v16, %v693_v19  ;;  %v763_v16 = vmul.f32 %v1574_v48, %v1574_v48  ;;  %v813_v19 = vsel %vm638_vm2, %v762_v12, 0.0  ;;  %v716_v48 = vsel %vm638_vm2, %v1588_v57, 0.0 }
 0x13b   : > { %667 = vst.msk [vmem:[%s1535_s13 + $0xe0] sm:$0xff] %vm638_vm2, %v1644_v7  ;;  %v797_v23 = vsel %vm638_vm2, %v754_v10, 0.0  ;;  %v706_v6 = vsel %vm638_vm2, %v1553_v36, 0.0  ;;  %v710_v36 = vsel %vm638_vm2, %v1567_v44, 0.0  ;;  %v714_v44 = vsel %vm638_vm2, %v1581_v52, 0.0 }
 0x13c   : > { %v544_v13 = vpop.f32.mrf.mxu0  ;;  %v621_v14 = vpop.f32.mrf.mxu1  ;;  %v798_v34 = vadd.f32 %v797_v23, %v796_v25  ;;  %v815_v25 = vsel %vm638_vm2, %v763_v16, 0.0 }
 0x13d   : > { %652 = vst.msk [vmem:[%s1535_s13 + $0x68] sm:$0xff] %vm638_vm2, %v544_v13  ;;  %v755_v17 = vmul.f32 %v544_v13, %v544_v13  ;;  %v696_v24 = vsel %vm638_vm2, %v544_v13, 0.0 }
 0x13e   : > { %v546_v21 = vpop.f32.mrf.mxu0  ;;  %v1655_v22 = vpop.f32.mrf.mxu1  ;;  %v697_v35 = vadd.f32 %v696_v24, %v695_v26  ;;  %v765_v26 = vmul.f32 %v1588_v57, %v1588_v57  ;;  %v720_v57 = vsel %vm638_vm2, %v1611_v20, 0.0 }
 0x13f   : > { %668 = vst.msk [vmem:[%s1535_s13 + $0xe8] sm:$0xff] %vm638_vm2, %v1655_v22  ;;  %v799_v30 = vsel %vm638_vm2, %v755_v17, 0.0  ;;  %v764_v21 = vmul.f32 %v1581_v52, %v1581_v52  ;;  %v718_v52 = vsel %vm638_vm2, %v1599_v5, 0.0 }
 0x140   : > { %v549_v27 = vpop.f32.mrf.mxu0  ;;  %v626_v29 = vpop.f32.mrf.mxu1  ;;  %v800_v42 = vadd.f32 %v799_v30, %v798_v34 }
 0x141   : > { %653 = vst.msk [vmem:[%s1535_s13 + $0x70] sm:$0xff] %vm638_vm2, %v549_v27  ;;  %v698_v31 = vsel %vm638_vm2, %v549_v27, 0.0  ;;  %v756_v33 = vmul.f32 %v549_v27, %v549_v27  ;;  %v817_v30 = vsel %vm638_vm2, %v764_v21, 0.0 }
 0x142   : > { %v551_v38 = vpop.f32.mrf.mxu0  ;;  %v1666_v39 = vpop.f32.mrf.mxu1  ;;  %v699_v43 = vadd.f32 %v698_v31, %v697_v35  ;;  %v766_v31 = vmul.f32 %v1599_v5, %v1599_v5  ;;  %v819_v35 = vsel %vm638_vm2, %v765_v26, 0.0  ;;  %v722_v5 = vsel %vm638_vm2, %v1622_v37, 0.0 }
 0x143   : > { %v801_v41 = vsel %vm638_vm2, %v756_v33, 0.0  ;;  %669 = vst.msk [vmem:[%s1535_s13 + $0xf0] sm:$0xff] %vm638_vm2, %v1666_v39  ;;  %v767_v38 = vmul.f32 %v1611_v20, %v1611_v20  ;;  %v724_v20 = vsel %vm638_vm2, %v1633_v55, 0.0  ;;  %v772_v2 = vmul.f32 %v1666_v39, %v1666_v39 }
 0x144   : > { %v554_v45 = vpop.f32.mrf.mxu0  ;;  %v631_v46 = vpop.f32.mrf.mxu1  ;;  %v802_v51 = vadd.f32 %v801_v41, %v800_v42 }
 0x145   : > { %654 = vst.msk [vmem:[%s1535_s13 + $0x78] sm:$0xff] %vm638_vm2, %v554_v45  ;;  %v700_v49 = vsel %vm638_vm2, %v554_v45, 0.0  ;;  %v757_v50 = vmul.f32 %v554_v45, %v554_v45  ;;  %v768_v45 = vmul.f32 %v1622_v37, %v1622_v37  ;;  %v726_v37 = vsel %vm638_vm2, %v1644_v7, 0.0 }
 0x146   : > { %v701_v54 = vadd.f32 %v700_v49, %v699_v43  ;;  %v556_v53 = vpop.f32.mrf.mxu0  ;;  %v1677_v56 = vpop.f32.mrf.mxu1  ;;  %v821_v43 = vsel %vm638_vm2, %v766_v31, 0.0  ;;  %v823_v49 = vsel %vm638_vm2, %v767_v38, 0.0 }
 0x147   : > { %v803_v60 = vsel %vm638_vm2, %v757_v50, 0.0  ;;  %670 = vst.msk [vmem:[%s1535_s13 + $0xf8] sm:$0xff] %vm638_vm2, %v1677_v56  ;;  %v769_v50 = vmul.f32 %v1633_v55, %v1633_v55  ;;  %v825_v53 = vsel %vm638_vm2, %v768_v45, 0.0  ;;  %v728_v55 = vsel %vm638_vm2, %v1655_v22, 0.0 }
 0x148   : > { %v703_v61 = vadd.f32 %v702_v58, %v701_v54  ;;  %v804_v62 = vadd.f32 %v803_v60, %v802_v51  ;;  %v636_v63 = vpop.f32.mrf.mxu1  ;;  %v770_v58 = vmul.f32 %v1644_v7, %v1644_v7  ;;  %v732_v8 = vsel %vm638_vm2, %v1677_v56, 0.0 }
 0x14a   : > { %v705_v28 = vadd.f32 %v704_v1, %v703_v61  ;;  %v806_v3 = vadd.f32 %v805_v0, %v804_v62  ;;  %v827_v61 = vsel %vm638_vm2, %v769_v50, 0.0  ;;  %v771_v62 = vmul.f32 %v1655_v22, %v1655_v22 }
 0x14b   : > { %v829_v1 = vsel %vm638_vm2, %v770_v58, 0.0 }
 0x14c   : > { %v707_v9 = vadd.f32 %v706_v6, %v705_v28  ;;  %v808_v10 = vadd.f32 %v807_v4, %v806_v3  ;;  %v773_v28 = vmul.f32 %v1677_v56, %v1677_v56  ;;  %v831_v7 = vsel %vm638_vm2, %v771_v62, 0.0 }
 0x14d   : > { %v730_v6 = vsel %vm638_vm2, %v1666_v39, 0.0 }
 0x14e   : > { %v709_v13 = vadd.f32 %v708_v32, %v707_v9  ;;  %v810_v14 = vadd.f32 %v809_v11, %v808_v10  ;;  %v833_v10 = vsel %vm638_vm2, %v772_v2, 0.0  ;;  %v835_v11 = vsel %vm638_vm2, %v773_v28, 0.0 }
 0x150   : > { %v812_v17 = vadd.f32 %v811_v15, %v810_v14  ;;  %v711_v18 = vadd.f32 %v710_v36, %v709_v13 }
 0x152   : > { %v713_v23 = vadd.f32 %v712_v40, %v711_v18  ;;  %v814_v24 = vadd.f32 %v813_v19, %v812_v17 }
 0x154   : > { %v715_v27 = vadd.f32 %v714_v44, %v713_v23  ;;  %v816_v29 = vadd.f32 %v815_v25, %v814_v24 }
 0x156   : > { %v717_v33 = vadd.f32 %v716_v48, %v715_v27  ;;  %v818_v34 = vadd.f32 %v817_v30, %v816_v29 }
 0x158   : > { %v719_v41 = vadd.f32 %v718_v52, %v717_v33  ;;  %v820_v42 = vadd.f32 %v819_v35, %v818_v34 }
 0x15a   : > { %v822_v46 = vadd.f32 %v821_v43, %v820_v42  ;;  %v721_v47 = vadd.f32 %v720_v57, %v719_v41 }
 0x15c   : > { %v824_v51 = vadd.f32 %v823_v49, %v822_v46  ;;  %v723_v54 = vadd.f32 %v722_v5, %v721_v47 }
 0x15e   : > { %v826_v59 = vadd.f32 %v825_v53, %v824_v51  ;;  %v725_v60 = vadd.f32 %v724_v20, %v723_v54 }
 0x160   : > { %v828_v63 = vadd.f32 %v827_v61, %v826_v59  ;;  %v727_v0 = vadd.f32 %v726_v37, %v725_v60 }
 0x162   : > { %v830_v3 = vadd.f32 %v829_v1, %v828_v63  ;;  %v729_v4 = vadd.f32 %v728_v55, %v727_v0 }
 0x164   : > { %v832_v9 = vadd.f32 %v831_v7, %v830_v3  ;;  %v731_v22 = vadd.f32 %v730_v6, %v729_v4 }
 0x166   : > { %v834_v32 = vadd.f32 %v833_v10, %v832_v9  ;;  %v733_v12 = vadd.f32 %v732_v8, %v731_v22 }
 0x168   : > { %v734_v13 = vrot.slane %v733_v12, 4  ;;  %v836_v14 = vadd.f32 %v835_v11, %v834_v32 }
 0x16a   : > { %v735_v39 = vadd.f32 %v734_v13, %v733_v12  ;;  %v837_v15 = vrot.slane %v836_v14, 4 }
 0x16c   : > { %v736_v36 = vrot.slane %v735_v39, 2  ;;  %v838_v56 = vadd.f32 %v837_v15, %v836_v14 }
 0x16e   : > { %v737_v16 = vadd.f32 %v736_v36, %v735_v39  ;;  %v839_v17 = vrot.slane %v838_v56, 2 }
 0x170   : > { %v738_v18 = vrot.slane %v737_v16, 1  ;;  %v840_v19 = vadd.f32 %v839_v17, %v838_v56 }
 0x172   : > { %v739_v40 = vadd.f32 %v738_v18, %v737_v16  ;;  %v841_v21 = vrot.slane %v840_v19, 1 }
 0x174   : > { %741 = vst.msk [vmem:[%s203_s14] sm:$0x1] %vm740_vm3, %v739_v40  ;;  %v842_v23 = vadd.f32 %v841_v21, %v840_v19 }
 0x175   : > { %1146 = shalt.err (!%p1143_p3)
}
 0x176   : > { %s1147_s13 = scalar_lea.hbm %s1772_s29, 16  ;;  %s1151_s27 = scalar_lea.hbm %s1849_s3, 32 }
 0x177   : > { %p1148_p4 = scmp.ne.s32.totalorder %s1772_s29, %s1147_s13  ;;  %p1152_p9 = scmp.lt.s32.totalorder %s1772_s29, %s1849_s3 }
 0x178   : > { %p1153_p10 = scmp.lt.s32.totalorder %s1151_s27, %s1147_s13 }
 0x179   : > { %p1149_p7 = pnand %p1148_p4, %p1291_p5 }
 0x17a   : > { %p1154_p11 = por %p1153_p10, %p1152_p9 }
 0x17b   : > { %p1150_p8 = pneg %p1149_p7 }
 0x17d   : > { %p1155_p12 = pnand %p1154_p11, %p1150_p8 }
 0x17f   : > { %1158 = shalt.err (!%p1155_p12)
}
 0x180   : > { %1088 = dma.vmem_to_hbm [thread:$0]  (%p1291_p5), %s1774_s20, 16, %s1772_s29, %s850_s8   ;;  %843 = vst.msk [vmem:[%s209_s22] sm:$0x1] %vm740_vm3, %v842_v23 }
 0x181   : > { %s854_s30 = scalar_lea.sflag [#allocation5], %s1762_s5  ;;  %s1159_s9 = scalar_lea.vmem %s1782_s23, 16 }
 0x182   : > { %p1160_p13 = scmp.ne.s32.totalorder %s1782_s23, %s1159_s9  ;;  %s1227_s10 = smov [#allocation4]  }
 0x183   : > { %s1163_s11 = sshll.u32 %s1227_s10, 4  ;;  %s1164_s11 = int_to_ptr.vmem [resolvable:$false] %s1163_s11 }
 0x184   : > { %p1161_p0 = pnand %p1160_p13, %p1291_p5  ;;  %s1165_s12 = scalar_lea.vmem %s1164_s11, 32 }
 0x185   : > { %p1166_p2 = scmp.lt.s32.totalorder %s1782_s23, %s1164_s11  ;;  %p1167_p3 = scmp.lt.s32.totalorder %s1165_s12, %s1159_s9 }
 0x186   : > { %p1162_p1 = pneg %p1161_p0 }
 0x187   : > { %p1168_p4 = por %p1167_p3, %p1166_p2 }
 0x189   : > { %p1169_p7 = pnand %p1168_p4, %p1162_p1 }
 0x18b   : > { %1172 = shalt.err (!%p1169_p7)
}
 0x18c   : > { %s1173_s20 = scalar_lea.hbm %s1780_s6, 16  ;;  %s1177_s29 = scalar_lea.hbm %s1850_s4, 32 }
 0x18d   : > { %p1174_p8 = scmp.ne.s32.totalorder %s1780_s6, %s1173_s20  ;;  %p1178_p11 = scmp.lt.s32.totalorder %s1780_s6, %s1850_s4 }
 0x18e   : > { %p1179_p12 = scmp.lt.s32.totalorder %s1177_s29, %s1173_s20 }
 0x18f   : > { %p1175_p9 = pnand %p1174_p8, %p1291_p5 }
 0x190   : > { %p1180_p13 = por %p1179_p12, %p1178_p11 }
 0x191   : > { %p1176_p10 = pneg %p1175_p9 }
 0x193   : > { %p1181_p0 = pnand %p1180_p13, %p1176_p10 }
 0x195   : > { %1184 = shalt.err (!%p1181_p0)
}
 0x196   : > { %1089 = dma.vmem_to_hbm [thread:$0]  (%p1291_p5), %s1782_s23, 16, %s1780_s6, %s854_s30  }
 0x197 PF: > { %p1099_p1 = scmp.ge.s32.totalorder %s1223_s18, 2  ;;  %s903_s7 = sand.u32 1, %s1211_s15  }
 0x198   : > { %s904_s14 = scalar_lea.sflag [#allocation3], %s903_s7 }
 0x199   : > { %p1093_p2 = pnand %p1099_p1, %p1295_p6 }
 0x19b   : > { %p1094_p3 = pneg %p1093_p2 }
 0x19d   : > { %1202 = dma.done.wait (%p1094_p3), %s904_s14, 16  }
 0x19e   : > { %1204 = vsyncadd (%p1094_p3), %s904_s14, 4294967280  ;;  %s912_s27 = scalar_lea.sflag [#allocation5], %s903_s7 }
 0x19f   : > { %1206 = dma.done.wait (%p1094_p3), %s912_s27, 16  }
 0x1a0   : > { %1208 = vsyncadd (%p1094_p3), %s912_s27, 4294967280  ;;  %p18_p5 = scmp.ge.s32.totalorder %s1278_s21, 4   ;;  %s1853_s15 = smov %s1215_s16 }
 0x1a1   : > { %s1854_s16 = smov %s1219_s17  ;;  %s1855_s17 = smov %s1289_s24 }
 0x1a2   : > { %s1856_s18 = smov %s1278_s21  ;;  %20 = sbr.rel (!%p18_p5) target bundleno = 5 (0x5), region = 92 }
 0x1a7   :  { %916 = vsyncpa [#allocation3], 1 }
 0x1a8   :  { %918 = vsyncpa [#allocation3 + $0x1], 1 }
 0x1a9   :  { %919 = vsyncpa [#allocation5], 1 }
 0x1aa   :  { %921 = vsyncpa [#allocation5 + $0x1], 1 }

</bundles_post_ra>
